<compile_context>
chip_gen: v5e
topology: v5e:2x2
jax: 0.10.0
libtpu: 0.0.40
codegen_flags: <defaults>
</compile_context>

<pallas_src>
import functools

import jax
import jax.numpy as jnp
from jax.experimental import pallas as pl
from jax.experimental.pallas import tpu as pltpu


def _dorefa_act_kernel(x_ref, scale_ref, o_ref, *, mul, levels):
    # x_ref: (TILE_R, L) tile, scale_ref: (TILE_R, 1) f32 (= out_scale/levels).
    x = x_ref[...].astype(jnp.float32)
    y = jnp.clip(x * mul, 0.0, 1.0)
    q = jnp.round(y * levels)                       # integer code in [0, levels]
    o_ref[...] = (q * scale_ref[...]).astype(o_ref.dtype)


def _parse_bits(feature_dtype: str) -> int:
    digits = "".join(ch for ch in feature_dtype if ch.isdigit())
    assert digits, f"cannot parse bit-width from feature_dtype={feature_dtype!r}"
    return int(digits)


def get_out_scale(out_scale, out_channels):
    # mirrors the PyTorch helper (deterministic, in-script), stays f32.
    if isinstance(out_scale, (list, tuple)):
        out_scale = jnp.asarray(out_scale, dtype=jnp.float32)
    elif isinstance(out_scale, (int, float)):
        out_scale = jnp.ones((out_channels,), dtype=jnp.float32) * out_scale
    else:
        out_scale = jnp.asarray(out_scale, dtype=jnp.float32)
    assert out_scale.shape == (out_channels,), \
        "The length of out_scale does not match out_channels"
    return out_scale


def dorefa_quantize_activation(x, *, feature_dtype="uint4", out_channels=None,
                               out_scale=1.0, multiplier=None, after_bn=True):
    """JAX/Pallas equivalent of DorefaQuantizeActivation.forward for NCHW x."""
    N, C, H, W = x.shape
    if out_channels is None:
        out_channels = C
    assert out_channels == C, "out_channels must match the channel dim of x"

    if multiplier is None:
        multiplier = 0.1 if after_bn else 1.0

    bits = _parse_bits(feature_dtype)
    levels = float(2 ** bits - 1)

    # Per-channel scale with 1/levels folded in (f32, NOT cast to x.dtype).
    scale_vec = get_out_scale(out_scale, out_channels)          # (C,) f32
    scale_fused = scale_vec / levels                            # (C,) f32
    R, L = N * C, H * W
    scale_rows = jnp.tile(scale_fused, N).reshape(R, 1)         # row r -> channel r % C

    # Lane-dense 2D view: rows = N*C, lanes = H*W.
    x2 = x.reshape(R, L)

    # Row tiling: ~1 MiB per input tile, rounded to the sublane multiple.
    itemsize = jnp.dtype(x.dtype).itemsize
    sublane = 16 if x.dtype == jnp.bfloat16 else 8
    target_bytes = 1 << 20
    tile_r = max(sublane,
                 (target_bytes // max(1, L * itemsize)) // sublane * sublane)
    if tile_r >= R:
        tile_r = R                                  # full extent -> single block
    grid_r = pl.cdiv(R, tile_r)

    kernel = functools.partial(
        _dorefa_act_kernel,
        mul=float(multiplier),
        levels=levels,
    )

    cost = pl.CostEstimate(
        flops=4 * x.size,
        transcendentals=0,
        bytes_accessed=2 * x.size * itemsize + scale_rows.size * 4,
    )

    out2 = pl.pallas_call(
        kernel,
        out_shape=jax.ShapeDtypeStruct((R, L), x.dtype),
        grid=(grid_r,),
        in_specs=[
            pl.BlockSpec((tile_r, L), lambda i: (i, 0)),
            pl.BlockSpec((tile_r, 1), lambda i: (i, 0)),
        ],
        out_specs=pl.BlockSpec((tile_r, L), lambda i: (i, 0)),
        compiler_params=pltpu.CompilerParams(
            dimension_semantics=("parallel",),
            vmem_limit_bytes=32 * 1024 * 1024,
        ),
        cost_estimate=cost,
    )(x2, scale_rows)

    return out2.reshape(N, C, H, W)


def _reference(x, feature_dtype, out_scale_vec, multiplier):
    bits = _parse_bits(feature_dtype)
    n = float(2 ** bits - 1)
    y = x.astype(jnp.float32) * multiplier
    y = jnp.clip(y, 0.0, 1.0)
    y = jnp.round(y * n) / n
    return (y * out_scale_vec.reshape(1, -1, 1, 1)).astype(x.dtype)


if __name__ == "__main__":
    key = jax.random.PRNGKey(0)
    N, C, H, W = 2, 4, 16, 16  # layout: NCHW
    x = jax.random.normal(key, (N, C, H, W), dtype=jnp.float32) * 3.0

    # Deterministic per-channel out_scale (module __init__ arg), multiplier
    # defaults to 0.1 (after_bn=True), feature_dtype "uint4" -> 15 levels.
    out_scale = [1.0, 0.5, 2.0, 1.5]

    y = dorefa_quantize_activation(
        x,
        feature_dtype="uint4",
        out_channels=C,
        out_scale=out_scale,
        multiplier=None,
        after_bn=True,
    )
    y = jax.block_until_ready(y)

    y_ref = _reference(x, "uint4", jnp.asarray(out_scale, jnp.float32), 0.1)
    assert y.shape == x.shape and y.dtype == x.dtype
    assert jnp.allclose(y, y_ref, atol=1e-6, rtol=1e-5), "mismatch vs reference"

    print("KERNEL_OK")
</pallas_src>

<mosaic_0001>
module attributes {stable_mosaic.version = 11 : i64} {
  func.func @_dorefa_act_kernel(%arg0: i32, %arg1: memref<8x256xf32, #tpu.memory_space<vmem>>, %arg2: memref<8x1xf32, #tpu.memory_space<vmem>>, %arg3: memref<8x256xf32, #tpu.memory_space<vmem>>) attributes {dimension_semantics = [#tpu.dimension_semantics<parallel>], iteration_bounds = array<i64: 1>, scalar_prefetch = 0 : i64, scratch_operands = 0 : i64, tpu.core_type = #tpu.core_type<tc>, window_params = [{transform_indices = @transform_0, window_bounds = array<i64: 8, 256>}, {transform_indices = @transform_1, window_bounds = array<i64: 8, 1>}, {transform_indices = @transform_2, window_bounds = array<i64: 8, 256>}]} {
    %c0 = arith.constant 0 : index
    %c0_0 = arith.constant 0 : index
    %0 = vector.load %arg1[%c0, %c0_0] : memref<8x256xf32, #tpu.memory_space<vmem>>, vector<8x256xf32>
    %cst = arith.constant 1.000000e-01 : f32
    %1 = vector.broadcast %cst : f32 to vector<8x256xf32>
    %2 = arith.mulf %0, %1 : vector<8x256xf32>
    %cst_1 = arith.constant 0.000000e+00 : f32
    %cst_2 = arith.constant 1.000000e+00 : f32
    %3 = vector.broadcast %cst_1 : f32 to vector<8x256xf32>
    %4 = arith.maximumf %3, %2 : vector<8x256xf32>
    %5 = vector.broadcast %cst_2 : f32 to vector<8x256xf32>
    %6 = arith.minimumf %5, %4 : vector<8x256xf32>
    %cst_3 = arith.constant 1.500000e+01 : f32
    %7 = vector.broadcast %cst_3 : f32 to vector<8x256xf32>
    %8 = arith.mulf %6, %7 : vector<8x256xf32>
    %9 = math.roundeven %8 : vector<8x256xf32>
    %c0_4 = arith.constant 0 : index
    %c0_5 = arith.constant 0 : index
    %10 = vector.load %arg2[%c0_4, %c0_5] : memref<8x1xf32, #tpu.memory_space<vmem>>, vector<8x1xf32>
    %11 = vector.broadcast %10 : vector<8x1xf32> to vector<8x256xf32>
    %12 = arith.mulf %9, %11 : vector<8x256xf32>
    %c0_6 = arith.constant 0 : index
    %c0_7 = arith.constant 0 : index
    %13 = vector.load %arg3[%c0_6, %c0_7] : memref<8x256xf32, #tpu.memory_space<vmem>>, vector<8x256xf32>
    tpu.vector_store %arg3[%c0_6, %c0_7], %12 {strides = array<i32>} : memref<8x256xf32, #tpu.memory_space<vmem>>, vector<8x256xf32>,
    return
  }
  func.func @transform_0(%arg0: i32) -> (i32, i32) {
    %c0_i32 = arith.constant 0 : i32
    %c0_i32_0 = arith.constant 0 : i32
    return %arg0, %c0_i32 : i32, i32
  }
  func.func @transform_1(%arg0: i32) -> (i32, i32) {
    %c0_i32 = arith.constant 0 : i32
    %c0_i32_0 = arith.constant 0 : i32
    return %arg0, %c0_i32 : i32, i32
  }
  func.func @transform_2(%arg0: i32) -> (i32, i32) {
    %c0_i32 = arith.constant 0 : i32
    %c0_i32_0 = arith.constant 0 : i32
    return %arg0, %c0_i32 : i32, i32
  }
}

</mosaic_0001>

<bundles_post_ra>
// kernel: tpu_custom_call.1
= control target key start
LH: loop header
LB: loop body
LE: loop exit
PB: predicated region body
PF: predicated region fallthrough
CT: control target
= control target key end

     0   :  { %7 = vsyncpa [#allocation3], 0  ;;  %s164_s0 = inlined_call_operand.hbm [shape: f32[8,256], index: 0, kind: input, shape index: {}]   ;;  %s165_s1 = inlined_call_operand.vmem [shape: f32[8,1], index: 1, kind: input, shape index: {}]   ;;  %s166_s2 = inlined_call_operand.hbm [shape: f32[8,256], index: 2, kind: output, shape index: {}]  }
   0x1   :  { %8 = vsyncpa [#allocation4], 0  ;;  %s14_s11 = sshll.u32 %s164_s0, 4  ;;  %s137_s12 = smov [#allocation2]   ;;  %s15_s11 = int_to_ptr.hbm [resolvable:$true] %s14_s11 }
   0x2   :  { %s16_s13 = sshll.u32 %s137_s12, 4  ;;  %s17_s13 = int_to_ptr.vmem [resolvable:$true] %s16_s13 }
   0x3   :  { %19 = dma.hbm_to_vmem [thread:$0]  %s15_s11, 256, %s17_s13, [#allocation3]  }
   0x4   :  { %133 = dma.done.wait [#allocation3], 256  }
   0x5   :  { %134 = vsyncadd [#allocation3], 4294967040  ;;  %v138_v0 = vmov 0   ;;  %v38_v1 = vld [vmem:[%s165_s1] sm:$0xff]  ;;  %v27_v3 = vld [vmem:[#allocation2 + $0x8] sm:$0xff]  ;;  %s139_s0 = smov [#allocation5]  }
   0x6   :  { %84 = vset.pattern.permute.xlu0 %v138_v0  ;;  %v26_v2 = vld [vmem:[#allocation2] sm:$0xff]  ;;  %v29_v5 = vmul.f32 0.1, %v27_v3  ;;  %s53_s1 = sshll.u32 %s139_s0, 4  ;;  %s55_s18 = sshll.u32 %s166_s2, 4  ;;  %s54_s1 = int_to_ptr.vmem [resolvable:$true] %s53_s1  ;;  %s56_s18 = int_to_ptr.hbm [resolvable:$true] %s55_s18 }
   0x7   :  { %41 = vperm.xlu0 %84, %v38_v1   ;;  %v28_v4 = vmul.f32 0.1, %v26_v2 }
   0x8   :  { %v31_v7 = vmax.f32 %v29_v5, 0.0 }
   0x9   :  { %v30_v6 = vmax.f32 %v28_v4, 0.0 }
   0xa   :  { %v33_v9 = vmin.f32 %v31_v7, 1.0 }
   0xb   :  { %v32_v8 = vmin.f32 %v30_v6, 1.0 }
   0xc   :  { %v35_v11 = vmul.f32 15.0, %v33_v9 }
   0xd   :  { %v34_v10 = vmul.f32 15.0, %v32_v8 }
   0xe   :  { %v75_v13 = vcvt.f32.s32 %v35_v11  ;;  %v78_v19 = vand.u32 2147483648, %v35_v11  ;;  %v73_v21 = vand.u32 2147483647, %v35_v11 }
   0xf   :  { %v67_v12 = vcvt.f32.s32 %v34_v10  ;;  %v70_v17 = vand.u32 2147483648, %v34_v10  ;;  %v65_v20 = vand.u32 2147483647, %v34_v10 }
  0x10   :  { %v76_v15 = vcvt.s32.f32 %v75_v13  ;;  %vm74_vm1 = vcmp.lt.f32.partialorder %v73_v21, 8388608.0 }
  0x11   :  { %v68_v14 = vcvt.s32.f32 %v67_v12  ;;  %vm66_vm0 = vcmp.lt.f32.partialorder %v65_v20, 8388608.0 }
  0x12   :  { %v77_v18 = vand.u32 2147483647, %v76_v15 }
  0x13   :  { %v69_v16 = vand.u32 2147483647, %v68_v14 }
  0x14   :  { %v79_v23 = vor.u32 %v78_v19, %v77_v18 }
  0x15   :  { %v71_v22 = vor.u32 %v70_v17, %v69_v16 }
  0x16   :  { %v80_v25 = vsel %vm74_vm1, %v79_v23, %v35_v11 }
  0x17   :  { %v72_v24 = vsel %vm66_vm0, %v71_v22, %v34_v10 }
  0x79   :  { %v42_v26 = vpop.permute.xlu0 %41 }
  0x7a   :  { %v44_v27 = vmul.f32 %v72_v24, %v42_v26  ;;  %v45_v28 = vmul.f32 %v80_v25, %v42_v26 }
  0x7c   :  { %46 = vst [vmem:[#allocation5] sm:$0xff] %v44_v27 }
  0x7d   :  { %47 = vst [vmem:[#allocation5 + $0x8] sm:$0xff] %v45_v28 }
  0x7e   :  { %58 = dma.vmem_to_hbm [thread:$0]  %s54_s1, 256, %s56_s18, [#allocation4]  }
  0x7f   :  { %135 = dma.done.wait [#allocation4], 256  }
  0x80   :  { %136 = vsyncadd [#allocation4], 4294967040 }
  0x81   :  { %63 = vsyncpa [#allocation3], 1 }
  0x82   :  { %64 = vsyncpa [#allocation4], 1 }

</bundles_post_ra>
